<compile_context>
chip_gen: v5e
topology: v5e:2x2
jax: 0.10.0
libtpu: 0.0.40
codegen_flags: <defaults>
</compile_context>

<pallas_src>
import numpy as np
import jax
import jax.numpy as jnp
from jax.experimental import pallas as pl
from jax.experimental.pallas import tpu as pltpu

# ---- model hyperparameters (STModel defaults) -------------------------------
D = 128                  # model dim
HEADS = 4
DH = D // HEADS          # 32 head dim
NUM_LAYERS = 3
T_FRAMES = 2
H_SP, W_SP = 3, 4
S_SP = H_SP * W_SP       # 12 spatial tokens per frame
N_TOK = T_FRAMES * S_SP  # 24 tokens (the in-module assert N == T*H*W is authoritative)
VOCAB = 85
HEAD_PAD = 128           # lane-dense padded head output width
VEC_ROWS = 16            # per-layer stacked-vector rows (9 used, padded to 16)
EPS = 1e-5               # nn.LayerNorm default
NEG = -1e30              # additive mask value


# ---------------------------------------------------------------------------
# lane-rotation convention probe (for the XLU-based interleaved pair swap)
# ---------------------------------------------------------------------------
_ROLL_SHIFTS = None


def _pair_swap_shifts():
    """(shift for even lanes, shift for odd lanes) used by pltpu.roll so that
    pair_swap(v)[:, i] == v[:, i ^ 1].  Probed once on-device (must be called
    eagerly, outside jit; main() does this before tracing)."""
    global _ROLL_SHIFTS
    if _ROLL_SHIFTS is None:
        def probe(x_ref, o_ref):
            o_ref[...] = pltpu.roll(x_ref[...], 1, axis=1)
        x = jnp.tile(jnp.arange(D, dtype=jnp.float32)[None, :], (8, 1))
        y = pl.pallas_call(
            probe, out_shape=jax.ShapeDtypeStruct((8, D), jnp.float32))(x)
        numpy_like = bool(jax.device_get(y)[0, 1] == 0.0)   # np.roll: out[1]=x[0]
        # even lane i needs partner i+1, odd lane i needs partner i-1
        _ROLL_SHIFTS = (D - 1, 1) if numpy_like else (1, D - 1)
    return _ROLL_SHIFTS


# ---------------------------------------------------------------------------
# fused Pallas kernel: 3 blocks + head for NB batch elements (M = NB*24 rows)
# ---------------------------------------------------------------------------
def make_st_kernel(shift_even, shift_odd):
    inv_sqrt2 = np.float32(1.0 / np.sqrt(2.0))

    def st_fused_kernel(x_ref, rot_ref, mask_ref, wqkv_ref, wout_ref, w1_ref,
                        w2_ref, vec_ref, b1_ref, hw_ref, hb_ref, o_ref,
                        xbuf_ref, ohbuf_ref):
        m = x_ref.shape[0]                                  # NB * N_TOK rows

        def pair_swap(v):
            # v[:, i] -> v[:, i ^ 1]: interleaved-rotary partner, computed on
            # the XLU (two lane rotations + parity select) instead of the MXU.
            lane = jax.lax.broadcasted_iota(jnp.int32, (m, D), 1)
            return jnp.where((lane & 1) == 0,
                             pltpu.roll(v, shift_even, axis=1),
                             pltpu.roll(v, shift_odd, axis=1))

        def layernorm(v, w, b):
            mu = jnp.mean(v, axis=-1, keepdims=True)
            var = jnp.mean(jnp.square(v - mu), axis=-1, keepdims=True)
            return (v - mu) * jax.lax.rsqrt(var + EPS) * w + b

        def attention(lnw, lnb, wqkv, wout, bout, rot_i, mask_i):
            cos = rot_ref[rot_i]                            # (m, D) f32
            sin_signed = rot_ref[rot_i + 1]                 # rotate-half sign folded in
            mask = mask_ref[mask_i]                         # (m, m) additive mask
            y = layernorm(xbuf_ref[...], lnw, lnb)
            qkv = jnp.dot(y.astype(jnp.bfloat16), wqkv,
                          preferred_element_type=jnp.float32)          # (m, 3D)
            q, k, v = qkv[:, :D], qkv[:, D:2 * D], qkv[:, 2 * D:]
            # 1/sqrt(DH) already folded into the Wq columns host-side.
            qr = (q * cos + pair_swap(q) * sin_signed).astype(jnp.bfloat16)
            kr = (k * cos + pair_swap(k) * sin_signed).astype(jnp.bfloat16)
            vb = v.astype(jnp.bfloat16)
            for h in range(HEADS):
                sl = slice(h * DH, (h + 1) * DH)
                s = jax.lax.dot_general(qr[:, sl], kr[:, sl],
                                        (((1,), (1,)), ((), ())),
                                        preferred_element_type=jnp.float32) + mask
                s = s - jnp.max(s, axis=-1, keepdims=True)
                e = jnp.exp(s)
                p = e * pl.reciprocal(jnp.sum(e, axis=-1, keepdims=True),
                                      approx=True)
                # per-head context at its static lane offset; single out-proj below
                ohbuf_ref[:, sl] = jnp.dot(p.astype(jnp.bfloat16), vb[:, sl],
                                           preferred_element_type=jnp.float32)
            attn = jnp.dot(ohbuf_ref[...].astype(jnp.bfloat16), wout,
                           preferred_element_type=jnp.float32)         # (m, D)
            xbuf_ref[...] = xbuf_ref[...] + attn + bout

        xbuf_ref[...] = x_ref[...]                          # residual stream in VMEM

        for l in range(NUM_LAYERS):
            row = lambda i, _l=l: vec_ref[_l, i:i + 1, :]   # (1, D) f32
            # spatial axial attention: per-frame, all spatial positions
            attention(row(0), row(1), wqkv_ref[l, 0], wout_ref[l, 0], row(2),
                      rot_i=0, mask_i=0)
            # temporal axial attention: same spatial position, causal over frames
            attention(row(3), row(4), wqkv_ref[l, 1], wout_ref[l, 1], row(5),
                      rot_i=2, mask_i=1)
            # MLP: LN -> Linear(d,4d) -> exact GELU -> Linear(4d,d)
            y = layernorm(xbuf_ref[...], row(6), row(7))
            h1 = jnp.dot(y.astype(jnp.bfloat16), w1_ref[l],
                         preferred_element_type=jnp.float32) + b1_ref[l]
            h1 = 0.5 * h1 * (1.0 + jax.lax.erf(h1 * inv_sqrt2))
            y2 = jnp.dot(h1.astype(jnp.bfloat16), w2_ref[l],
                         preferred_element_type=jnp.float32) + row(8)
            xbuf_ref[...] = xbuf_ref[...] + y2

        # head, padded to 128 lanes (lane-dense store); sliced to 85 outside
        o_ref[...] = jnp.dot(xbuf_ref[...].astype(jnp.bfloat16), hw_ref[...],
                             preferred_element_type=jnp.float32) + hb_ref[...]

    return st_fused_kernel


# ---------------------------------------------------------------------------
# pallas_call wrapper
# ---------------------------------------------------------------------------
def _const_spec(shape):
    n = len(shape)
    return pl.BlockSpec(shape, lambda b, _n=n: (0,) * _n)


def choose_nb(batch):
    """Batch elements per grid step: grow MXU fill (M = NB*24 rows) while
    keeping >= 2 grid steps so the batch axis can shard across both v7x TCs."""
    if batch <= 1:
        return 1
    return max(1, min(8, batch // 2))


def run_fused(x, c):
    batch = x.shape[0]
    nb = choose_nb(batch)
    n_steps = pl.cdiv(batch, nb)
    b_pad = n_steps * nb
    if b_pad != batch:
        x = jnp.concatenate(
            [x, jnp.zeros((b_pad - batch, N_TOK, D), x.dtype)], axis=0)
    m = nb * N_TOK
    x_flat = x.reshape(b_pad * N_TOK, D)

    # NB-dependent tables (cheap XLA ops / constant-folded under jit):
    rot = jnp.tile(c['rot'], (1, nb, 1))                              # (4, m, D)
    eye = jnp.eye(nb, dtype=bool)
    masks = jnp.where(eye[None, :, None, :, None],                    # block-diag
                      c['masks'][:, None, :, None, :],                # over batch
                      NEG).reshape(2, m, m)

    operands = (x_flat, rot, masks, c['wqkv'], c['wout'], c['w1'], c['w2'],
                c['vecs'], c['b1'], c['hw'], c['hb'])
    in_specs = [pl.BlockSpec((m, D), lambda b: (b, 0))]
    in_specs += [_const_spec(op.shape) for op in operands[1:]]

    kernel = make_st_kernel(*_pair_swap_shifts())
    out = pl.pallas_call(
        kernel,
        out_shape=jax.ShapeDtypeStruct((b_pad * N_TOK, HEAD_PAD), jnp.float32),
        grid_spec=pltpu.PrefetchScalarGridSpec(
            num_scalar_prefetch=0,
            grid=(n_steps,),
            in_specs=in_specs,
            out_specs=pl.BlockSpec((m, HEAD_PAD), lambda b: (b, 0)),
            scratch_shapes=[pltpu.VMEM((m, D), jnp.float32),   # residual stream
                            pltpu.VMEM((m, D), jnp.float32)],  # per-head context
        ),
        compiler_params=pltpu.CompilerParams(
            dimension_semantics=("parallel",)),
    )(*operands)
    return out.reshape(b_pad, N_TOK, HEAD_PAD)[:batch]


# ---------------------------------------------------------------------------
# host-side constant tables
# ---------------------------------------------------------------------------
def rotary_tables():
    # temporal rotary ('lang', dim=DH, theta=10000) over the frame index
    inv = 1.0 / (10000.0 ** (np.arange(0, DH, 2).astype(np.float64) / DH))      # (DH//2,)
    f_t = np.repeat(np.arange(T_FRAMES)[:, None] * inv[None, :], 2, axis=-1)    # (T, DH)
    # spatial axial rotary ('pixel', dim=DH//2, max_freq=10) over (H, W)
    dp = DH // 2
    base = np.linspace(1.0, 10.0 / 2.0, dp // 2) * np.pi                        # (dp//2,)
    ph = np.linspace(-1.0, 1.0, H_SP)
    pw = np.linspace(-1.0, 1.0, W_SP)
    fh = np.repeat(ph[:, None] * base[None, :], 2, axis=-1)                     # (H, dp)
    fw = np.repeat(pw[:, None] * base[None, :], 2, axis=-1)                     # (W, dp)
    f_s = np.concatenate(
        [np.broadcast_to(fh[:, None, :], (H_SP, W_SP, dp)),
         np.broadcast_to(fw[None, :, :], (H_SP, W_SP, dp))], axis=-1
    ).reshape(S_SP, DH)                                                          # (S, DH)
    sgn = np.where(np.arange(DH) % 2 == 0, -1.0, 1.0)   # rotate_half sign folded into sin

    def expand(freqs, over_time):
        full = (np.repeat(freqs, S_SP, axis=0) if over_time
                else np.tile(freqs, (T_FRAMES, 1)))                              # (N, DH)
        cos = np.tile(np.cos(full), (1, HEADS))                                  # (N, D)
        sin = np.tile(np.sin(full) * sgn[None, :], (1, HEADS))                   # (N, D)
        return cos.astype(np.float32), sin.astype(np.float32)

    cos_s, sin_s = expand(f_s, over_time=False)
    cos_t, sin_t = expand(f_t, over_time=True)
    return jnp.asarray(np.stack([cos_s, sin_s, cos_t, sin_t]))                   # (4, N, D)


def build_masks():
    idx = np.arange(N_TOK)
    frame = idx // S_SP
    spos = idx % S_SP
    same_frame = frame[:, None] == frame[None, :]
    mask_sp = np.where(same_frame, 0.0, NEG).astype(np.float32)                  # (N, N)
    same_pos = spos[:, None] == spos[None, :]
    causal = frame[None, :] <= frame[:, None]
    mask_tm = np.where(same_pos & causal, 0.0, NEG).astype(np.float32)           # (N, N)
    return jnp.asarray(np.stack([mask_sp, mask_tm]))                             # (2, N, N)


# ---------------------------------------------------------------------------
# deterministic parameter init (synthetic; shapes match the PyTorch module)
# ---------------------------------------------------------------------------
def init_params(key):
    def normal(k, shape, s=0.02):
        return jax.random.normal(k, shape, jnp.float32) * s

    keys = jax.random.split(key, 2 + NUM_LAYERS)
    params = {
        'token_emb': normal(keys[0], (VOCAB, D)),
        'time_emb': jnp.zeros((T_FRAMES, D), jnp.float32),   # module inits to zeros
        'pos2d': jnp.zeros((S_SP, D), jnp.float32),          # module inits to zeros
        'head_w': normal(keys[1], (D, VOCAB)),
        'head_b': jnp.zeros((VOCAB,), jnp.float32),
        'blocks': [],
    }
    for i in range(NUM_LAYERS):
        bk = jax.random.split(keys[2 + i], 6)
        params['blocks'].append(dict(
            ln1_w=jnp.ones((D,), jnp.float32), ln1_b=jnp.zeros((D,), jnp.float32),
            ln2_w=jnp.ones((D,), jnp.float32), ln2_b=jnp.zeros((D,), jnp.float32),
            ln3_w=jnp.ones((D,), jnp.float32), ln3_b=jnp.zeros((D,), jnp.float32),
            wqkv_s=normal(bk[0], (D, 3 * D)),
            wout_s=normal(bk[1], (D, D)), bout_s=jnp.zeros((D,), jnp.float32),
            wqkv_t=normal(bk[2], (D, 3 * D)),
            wout_t=normal(bk[3], (D, D)), bout_t=jnp.zeros((D,), jnp.float32),
            w1=normal(bk[4], (D, 4 * D)), b1=jnp.zeros((4 * D,), jnp.float32),
            w2=normal(bk[5], (4 * D, D)), b2=jnp.zeros((D,), jnp.float32),
        ))
    return params


def prepare_operands(params):
    """Stack / fold / pre-cast everything the fused kernel consumes."""
    q_scale = np.float32(1.0 / np.sqrt(DH))

    def prep_qkv(w):     # fold the 1/sqrt(DH) attention scale into the Wq columns
        return jnp.concatenate([w[:, :D] * q_scale, w[:, D:]], axis=1)

    blocks = params['blocks']
    wqkv_all = jnp.stack([jnp.stack([prep_qkv(b['wqkv_s']), prep_qkv(b['wqkv_t'])])
                          for b in blocks]).astype(jnp.bfloat16)        # (L,2,D,3D)
    wout_all = jnp.stack([jnp.stack([b['wout_s'], b['wout_t']])
                          for b in blocks]).astype(jnp.bfloat16)        # (L,2,D,D)
    w1_all = jnp.stack([b['w1'] for b in blocks]).astype(jnp.bfloat16)  # (L,D,4D)
    w2_all = jnp.stack([b['w2'] for b in blocks]).astype(jnp.bfloat16)  # (L,4D,D)

    def layer_rows(b):
        rows = jnp.stack([b['ln1_w'], b['ln1_b'], b['bout_s'],
                          b['ln2_w'], b['ln2_b'], b['bout_t'],
                          b['ln3_w'], b['ln3_b'], b['b2']])             # (9, D)
        return jnp.concatenate(
            [rows, jnp.zeros((VEC_ROWS - 9, D), jnp.float32)], axis=0)  # (16, D)

    vecs_all = jnp.stack([layer_rows(b) for b in blocks])               # (L,16,D) f32
    b1_all = jnp.stack([b['b1'].reshape(1, 4 * D) for b in blocks])     # (L,1,4D) f32

    hw = jnp.zeros((D, HEAD_PAD), jnp.float32).at[:, :VOCAB].set(
        params['head_w']).astype(jnp.bfloat16)                          # (D,128) bf16
    hb = jnp.zeros((1, HEAD_PAD), jnp.float32).at[:, :VOCAB].set(
        params['head_b'].reshape(1, VOCAB))                             # (1,128) f32

    # positional + time embeddings combined once (token n = t*S + s)
    pos_time = (jnp.tile(params['pos2d'], (T_FRAMES, 1)) +
                jnp.repeat(params['time_emb'], S_SP, axis=0))           # (N, D)

    return dict(token_emb=params['token_emb'], pos_time=pos_time,
                rot=rotary_tables(), masks=build_masks(),
                wqkv=wqkv_all, wout=wout_all, w1=w1_all, w2=w2_all,
                vecs=vecs_all, b1=b1_all, hw=hw, hb=hb)


# ---------------------------------------------------------------------------
# full forward pass
# ---------------------------------------------------------------------------
def st_model_forward(seq, c):
    # embedding gather + positional/time add stay as XLA glue (data-dependent gather)
    tok = jnp.take(c['token_emb'], seq, axis=0)          # (B, N, D)
    x = tok + c['pos_time'][None]
    out = run_fused(x, c)                                # (B, N, 128) fused Pallas kernel
    return out[:, :, :VOCAB]                             # (B, N, 85)


if __name__ == "__main__":
    key = jax.random.PRNGKey(0)
    pkey, skey = jax.random.split(key)
    params = init_params(pkey)
    consts = prepare_operands(params)
    _pair_swap_shifts()            # probe the lane-rotation convention eagerly

    fwd = jax.jit(lambda s: st_model_forward(s, consts))

    # spec-sized run (B=2 -> NB=1, grid=2: both v7x TensorCores active)
    B = 2
    seq = jax.random.randint(skey, (B, N_TOK), 0, VOCAB, dtype=jnp.int32)
    out = jax.block_until_ready(fwd(seq))
    assert out.shape == (B, N_TOK, VOCAB), out.shape
    assert bool(jnp.all(jnp.isfinite(out)))

    # batch-blocked run (B=9 -> NB=4, grid=3, batch padding + block-diag mask);
    # its first two rows must agree with the NB=1 result.
    B2 = 9
    seq2 = jax.random.randint(jax.random.PRNGKey(1), (B2, N_TOK), 0, VOCAB,
                              dtype=jnp.int32)
    seq2 = seq2.at[:B].set(seq)
    out2 = jax.block_until_ready(fwd(seq2))
    assert out2.shape == (B2, N_TOK, VOCAB), out2.shape
    assert bool(jnp.all(jnp.isfinite(out2)))
    assert bool(jnp.allclose(out2[:B], out, atol=2e-3, rtol=2e-3)), \
        "batch-blocked path disagrees with per-element path"

    print("KERNEL_OK")
</pallas_src>

<mosaic_0001>
module attributes {stable_mosaic.version = 11 : i64} {
  func.func @probe(%arg0: memref<8x128xf32, #tpu.memory_space<vmem>>, %arg1: memref<8x128xf32, #tpu.memory_space<vmem>>) attributes {dimension_semantics = [], scalar_prefetch = 0 : i64, scratch_operands = 0 : i64, tpu.core_type = #tpu.core_type<tc>} {
    %c0 = arith.constant 0 : index
    %c0_0 = arith.constant 0 : index
    %0 = vector.load %arg0[%c0, %c0_0] : memref<8x128xf32, #tpu.memory_space<vmem>>, vector<8x128xf32>
    %c1_i32 = arith.constant 1 : i32
    %1 = tpu.dynamic_rotate %0 by %c1_i32 dim 1 : vector<8x128xf32>, i32 -> vector<8x128xf32>
    %c0_1 = arith.constant 0 : index
    %c0_2 = arith.constant 0 : index
    %2 = vector.load %arg1[%c0_1, %c0_2] : memref<8x128xf32, #tpu.memory_space<vmem>>, vector<8x128xf32>
    tpu.vector_store %arg1[%c0_1, %c0_2], %1 {strides = array<i32>} : memref<8x128xf32, #tpu.memory_space<vmem>>, vector<8x128xf32>,
    return
  }
}

</mosaic_0001>

<bundles_post_ra>
// kernel: tpu_custom_call.1
= control target key start
LH: loop header
LB: loop body
LE: loop exit
PB: predicated region body
PF: predicated region fallthrough
CT: control target
= control target key end

     0   :  { %6 = vsyncpa [#allocation3], 0  ;;  %s118_s0 = inlined_call_operand.hbm [shape: f32[8,128], index: 0, kind: input, shape index: {}]   ;;  %s119_s1 = inlined_call_operand.hbm [shape: f32[8,128], index: 1, kind: output, shape index: {}]  }
   0x1   :  { %7 = vsyncpa [#allocation4], 0  ;;  %s13_s8 = sshll.u32 %s118_s0, 4  ;;  %s99_s9 = smov [#allocation2]   ;;  %s14_s8 = int_to_ptr.hbm [resolvable:$true] %s13_s8 }
   0x2   :  { %s15_s10 = sshll.u32 %s99_s9, 4  ;;  %s16_s10 = int_to_ptr.vmem [resolvable:$true] %s15_s10 }
   0x3   :  { %18 = dma.hbm_to_vmem [thread:$0]  %s14_s8, 128, %s16_s10, [#allocation3]  }
   0x4   :  { %95 = dma.done.wait [#allocation3], 128  }
   0x5   :  { %96 = vsyncadd [#allocation3], 4294967168  ;;  %v23_v0 = vld [vmem:[#allocation2] sm:$0xff]  ;;  %s100_s11 = smov 1   ;;  %s101_s12 = smov [#allocation5]  }
   0x6   :  { %24 = vrot.lane.b32.xlu0 %v23_v0, %s100_s11  ;;  %s32_s13 = sshll.u32 %s101_s12, 4  ;;  %s34_s16 = sshll.u32 %s119_s1, 4  ;;  %s33_s13 = int_to_ptr.vmem [resolvable:$true] %s32_s13  ;;  %s35_s16 = int_to_ptr.hbm [resolvable:$true] %s34_s16 }
  0x78   :  { %v25_v1 = vpop.permute.xlu0 %24 }
  0x79   :  { %26 = vst [vmem:[#allocation5] sm:$0xff] %v25_v1 }
  0x7a   :  { %37 = dma.vmem_to_hbm [thread:$0]  %s33_s13, 128, %s35_s16, [#allocation4]  }
  0x7b   :  { %97 = dma.done.wait [#allocation4], 128  }
  0x7c   :  { %98 = vsyncadd [#allocation4], 4294967168 }
  0x7d   :  { %42 = vsyncpa [#allocation3], 1 }
  0x7e   :  { %43 = vsyncpa [#allocation4], 1 }

</bundles_post_ra>
